<compile_context>
chip_gen: v7x
topology: tpu7x:2x2x1
jax: 0.10.0
libtpu: 0.0.40
codegen_flags: <defaults>
</compile_context>

<pallas_src>
import jax
import jax.numpy as jnp
from jax import lax
from jax.experimental import pallas as pl
from jax.experimental.pallas import tpu as pltpu


def _round_up(x, m):
    return (x + m - 1) // m * m


def _mlp_tagger_kernel(idx_ref,     # (S, 1)        int32 word indices
                       tag_ref,     # (S, T)        pre-tag embeddings
                       wa_ref,      # (Vp+T+8, H)   [emb@W1e ; W1t ; b1-pad]
                       wb_ref,      # (H+8, T)      [W2.T ; b2-pad]
                       out_ref):    # (S, T)        log-probabilities
    S, T = out_ref.shape
    H = wa_ref.shape[1]
    Vp = wa_ref.shape[0] - T - 8           # padded vocab rows in slab_a

    # ---- unpack the packed weight slabs (static, sublane-aligned slices) ----
    wa = wa_ref[...]
    emb_w1 = wa[:Vp, :]                    # (Vp, H)  embeddings folded into W1
    w1t = wa[Vp:Vp + T, :]                 # (T, H)   pre-tag half of W1 (transposed)
    b1 = wa[Vp + T:Vp + T + 1, :]          # (1, H)

    wb = wb_ref[...]
    w2t = wb[:H, :]                        # (H, T)
    b2 = wb[H:H + 1, :]                    # (1, T)

    # ---- embedding lookup fused with linear1: onehot @ (E @ W1e) ----
    col = lax.broadcasted_iota(jnp.int32, (S, Vp), 1)
    onehot = (col == idx_ref[...]).astype(jnp.float32)          # (S, Vp)

    z1 = (jnp.dot(onehot, emb_w1, preferred_element_type=jnp.float32)
          + jnp.dot(tag_ref[...], w1t, preferred_element_type=jnp.float32)
          + b1)
    a1 = jnp.maximum(z1, 0.0)

    # ---- linear2 ----
    z2 = jnp.dot(a1, w2t, preferred_element_type=jnp.float32) + b2

    # ---- log_softmax along dim=1 (numerically stable) ----
    m = jnp.max(z2, axis=1, keepdims=True)
    s = z2 - m
    lse = jnp.log(jnp.sum(jnp.exp(s), axis=1, keepdims=True))
    out_ref[...] = (s - lse).astype(out_ref.dtype)


def prepare_params(params):
    """One-time weight folding + packing, hoisted off the per-call path."""
    emb = params["embeddings"].astype(jnp.float32)   # (V, E)
    w1 = params["w1"].astype(jnp.float32)            # (H, E + T) PyTorch layout
    b1 = params["b1"].astype(jnp.float32)            # (H,)
    w2 = params["w2"].astype(jnp.float32)            # (T, H)
    b2 = params["b2"].astype(jnp.float32)            # (T,)

    V, E = emb.shape
    H = w1.shape[0]
    T = w2.shape[0]

    # Fold the embedding table into the embedding half of linear1.
    # cat order is (embedding, pre_tag) => first E input columns of W1.
    emb_w1 = emb @ jnp.transpose(w1[:, :E])          # (V, H)
    w1t = jnp.transpose(w1[:, E:])                   # (T, H)
    w2t = jnp.transpose(w2)                          # (H, T)

    # Pad the vocab rows to an 8-sublane multiple (padded rows are zero and
    # can never be selected because indices are clamped to [0, V-1]).
    Vp = _round_up(V, 8)
    if Vp != V:
        emb_w1 = jnp.concatenate(
            [emb_w1, jnp.zeros((Vp - V, H), jnp.float32)], axis=0)

    # Pack constants into two slabs -> two input DMAs instead of six.
    b1_rows = jnp.zeros((8, H), jnp.float32).at[0].set(b1)
    slab_a = jnp.concatenate([emb_w1, w1t, b1_rows], axis=0)    # (Vp+T+8, H)

    b2_rows = jnp.zeros((8, T), jnp.float32).at[0].set(b2)
    slab_b = jnp.concatenate([w2t, b2_rows], axis=0)            # (H+8, T)

    return {"slab_a": slab_a, "slab_b": slab_b, "vocab_size": V}


def model1_forward(word_embed_idx, pre_tag_embed, prepared):
    """Forward for S tokens in a single pallas_call.

    word_embed_idx : int array, shape (S,)
    pre_tag_embed  : float array, shape (S, tag_size)
    Returns (S, tag_size) log-probabilities.  S == 1 reproduces the original
    PyTorch module's single-step forward exactly.
    """
    slab_a = prepared["slab_a"]
    slab_b = prepared["slab_b"]

    S, T = pre_tag_embed.shape
    H = slab_a.shape[1]
    Vp = slab_a.shape[0] - T - 8

    # PyTorch nn.Embedding raises on out-of-range indices; we clamp instead.
    idx = jnp.clip(word_embed_idx.astype(jnp.int32),
                   0, prepared["vocab_size"] - 1).reshape(S, 1)
    pre_tag = pre_tag_embed.astype(jnp.float32)

    flops = 2 * S * (Vp * H + T * H + H * T)
    bytes_accessed = 4 * (S + S * T + slab_a.size + slab_b.size + S * T)
    cost = pl.CostEstimate(flops=flops, transcendentals=S * T,
                           bytes_accessed=bytes_accessed)

    return pl.pallas_call(
        _mlp_tagger_kernel,
        out_shape=jax.ShapeDtypeStruct((S, T), jnp.float32),
        grid=(1,),
        in_specs=[
            pl.BlockSpec((S, 1), lambda i: (0, 0)),            # word indices
            pl.BlockSpec((S, T), lambda i: (0, 0)),            # pre-tag embeds
            pl.BlockSpec((Vp + T + 8, H), lambda i: (0, 0)),   # slab A
            pl.BlockSpec((H + 8, T), lambda i: (0, 0)),        # slab B
        ],
        out_specs=pl.BlockSpec((S, T), lambda i: (0, 0)),
        compiler_params=pltpu.CompilerParams(
            dimension_semantics=("arbitrary",)),
        cost_estimate=cost,
    )(idx, pre_tag, slab_a, slab_b)


def _reference(word_embed_idx, pre_tag_embed, params):
    """Pure-JAX reference matching the PyTorch forward (row-batched)."""
    emb = params["embeddings"][word_embed_idx.reshape(-1)]     # (S, E)
    cat = jnp.concatenate([emb, pre_tag_embed], axis=1)
    z1 = jnp.matmul(cat, params["w1"].T,
                    precision=lax.Precision.HIGHEST) + params["b1"]
    a1 = jnp.maximum(z1, 0.0)
    z2 = jnp.matmul(a1, params["w2"].T,
                    precision=lax.Precision.HIGHEST) + params["b2"]
    return jax.nn.log_softmax(z2, axis=1)


if __name__ == "__main__":
    vocab_size, embedding_dim, tag_size, hidden_size = 32, 16, 8, 32
    seq_len = 8

    key = jax.random.PRNGKey(0)
    k_emb, k_w1, k_b1, k_w2, k_b2, k_idx, k_tag = jax.random.split(key, 7)

    params = {
        "embeddings": jax.random.normal(k_emb, (vocab_size, embedding_dim),
                                        jnp.float32),
        "w1": 0.1 * jax.random.normal(k_w1, (hidden_size,
                                             embedding_dim + tag_size),
                                      jnp.float32),
        "b1": 0.1 * jax.random.normal(k_b1, (hidden_size,), jnp.float32),
        "w2": 0.1 * jax.random.normal(k_w2, (tag_size, hidden_size),
                                      jnp.float32),
        "b2": 0.1 * jax.random.normal(k_b2, (tag_size,), jnp.float32),
    }

    # One-time parameter folding / packing (NOT on the per-step path).
    prepared = jax.block_until_ready(prepare_params(params))

    fwd = jax.jit(model1_forward)

    # 1) Single-token step: exact semantics of the original PyTorch forward.
    word_idx_1 = jax.random.randint(k_idx, (1,), 0, vocab_size, jnp.int32)
    pre_tag_1 = jax.random.normal(k_tag, (1, tag_size), jnp.float32)
    out_1 = jax.block_until_ready(fwd(word_idx_1, pre_tag_1, prepared))
    ref_1 = _reference(word_idx_1, pre_tag_1, params)
    assert out_1.shape == (1, tag_size)
    assert jnp.allclose(out_1, ref_1, atol=1e-4, rtol=1e-4), (out_1, ref_1)

    # 2) A sequence of tokens folded into ONE pallas_call (amortized launch,
    #    VMEM-resident weights, single dense (S, T) output store).
    word_idx_s = jax.random.randint(k_idx, (seq_len,), 0, vocab_size,
                                    jnp.int32)
    pre_tag_s = jax.random.normal(k_tag, (seq_len, tag_size), jnp.float32)
    out_s = jax.block_until_ready(fwd(word_idx_s, pre_tag_s, prepared))
    ref_s = _reference(word_idx_s, pre_tag_s, params)
    assert out_s.shape == (seq_len, tag_size)
    assert jnp.allclose(out_s, ref_s, atol=1e-4, rtol=1e-4), (out_s, ref_s)

    print("KERNEL_OK")
</pallas_src>

<mosaic_0001>
module attributes {stable_mosaic.version = 11 : i64} {
  func.func @_mlp_tagger_kernel(%arg0: i32, %arg1: memref<1x1xi32, #tpu.memory_space<vmem>>, %arg2: memref<1x8xf32, #tpu.memory_space<vmem>>, %arg3: memref<48x32xf32, #tpu.memory_space<vmem>>, %arg4: memref<40x8xf32, #tpu.memory_space<vmem>>, %arg5: memref<1x8xf32, #tpu.memory_space<vmem>>) attributes {dimension_semantics = [#tpu.dimension_semantics<arbitrary>], iteration_bounds = array<i64: 1>, scalar_prefetch = 0 : i64, scratch_operands = 0 : i64, tpu.core_type = #tpu.core_type<tc>, window_params = [{pipeline_mode = #tpu.pipeline_mode<synchronous>, transform_indices = @transform_0, window_bounds = array<i64: 1, 1>}, {pipeline_mode = #tpu.pipeline_mode<synchronous>, transform_indices = @transform_1, window_bounds = array<i64: 1, 8>}, {pipeline_mode = #tpu.pipeline_mode<synchronous>, transform_indices = @transform_2, window_bounds = array<i64: 48, 32>}, {pipeline_mode = #tpu.pipeline_mode<synchronous>, transform_indices = @transform_3, window_bounds = array<i64: 40, 8>}, {pipeline_mode = #tpu.pipeline_mode<synchronous>, transform_indices = @transform_4, window_bounds = array<i64: 1, 8>}]} {
    %c0 = arith.constant 0 : index
    %c0_0 = arith.constant 0 : index
    %0 = vector.load %arg3[%c0, %c0_0] : memref<48x32xf32, #tpu.memory_space<vmem>>, vector<48x32xf32>
    %1 = vector.extract_strided_slice %0 {offsets = [0, 0], sizes = [32, 32], strides = [1, 1]} : vector<48x32xf32> to vector<32x32xf32>
    %2 = vector.extract_strided_slice %0 {offsets = [32, 0], sizes = [8, 32], strides = [1, 1]} : vector<48x32xf32> to vector<8x32xf32>
    %3 = vector.extract_strided_slice %0 {offsets = [40, 0], sizes = [1, 32], strides = [1, 1]} : vector<48x32xf32> to vector<1x32xf32>
    %c0_1 = arith.constant 0 : index
    %c0_2 = arith.constant 0 : index
    %4 = vector.load %arg4[%c0_1, %c0_2] : memref<40x8xf32, #tpu.memory_space<vmem>>, vector<40x8xf32>
    %5 = vector.extract_strided_slice %4 {offsets = [0, 0], sizes = [32, 8], strides = [1, 1]} : vector<40x8xf32> to vector<32x8xf32>
    %6 = vector.extract_strided_slice %4 {offsets = [32, 0], sizes = [1, 8], strides = [1, 1]} : vector<40x8xf32> to vector<1x8xf32>
    %7 = tpu.iota {dimensions = array<i32: 1>} : vector<1x32xi32>
    %c0_3 = arith.constant 0 : index
    %c0_4 = arith.constant 0 : index
    %8 = vector.load %arg1[%c0_3, %c0_4] : memref<1x1xi32, #tpu.memory_space<vmem>>, vector<1x1xi32>
    %9 = vector.broadcast %8 : vector<1x1xi32> to vector<1x32xi32>
    %10 = arith.cmpi eq, %7, %9 : vector<1x32xi32>
    %11 = arith.extui %10 : vector<1x32xi1> to vector<1x32xi32>
    %12 = arith.sitofp %11 : vector<1x32xi32> to vector<1x32xf32>
    %cst = arith.constant dense<0.000000e+00> : vector<1x32xf32>
    %13 = tpu.matmul %12, %1, %cst {dimension_numbers = #tpu.dot_dimension_numbers<[1], [0], [0], [1], [0, 0, 1, 1], [], []>} : vector<1x32xf32>, vector<32x32xf32>, vector<1x32xf32> -> vector<1x32xf32>
    %c0_5 = arith.constant 0 : index
    %c0_6 = arith.constant 0 : index
    %14 = vector.load %arg2[%c0_5, %c0_6] : memref<1x8xf32, #tpu.memory_space<vmem>>, vector<1x8xf32>
    %cst_7 = arith.constant dense<0.000000e+00> : vector<1x32xf32>
    %15 = tpu.matmul %14, %2, %cst_7 {dimension_numbers = #tpu.dot_dimension_numbers<[1], [0], [0], [1], [0, 0, 1, 1], [], []>} : vector<1x8xf32>, vector<8x32xf32>, vector<1x32xf32> -> vector<1x32xf32>
    %16 = arith.addf %13, %15 : vector<1x32xf32>
    %17 = arith.addf %16, %3 : vector<1x32xf32>
    %cst_8 = arith.constant 0.000000e+00 : f32
    %18 = vector.broadcast %cst_8 : f32 to vector<1x32xf32>
    %19 = arith.maximumf %17, %18 : vector<1x32xf32>
    %cst_9 = arith.constant dense<0.000000e+00> : vector<1x8xf32>
    %20 = tpu.matmul %19, %5, %cst_9 {dimension_numbers = #tpu.dot_dimension_numbers<[1], [0], [0], [1], [0, 0, 1, 1], [], []>} : vector<1x32xf32>, vector<32x8xf32>, vector<1x8xf32> -> vector<1x8xf32>
    %21 = arith.addf %20, %6 : vector<1x8xf32>
    %cst_10 = arith.constant dense<0xFF800000> : vector<1xf32>
    %22 = vector.multi_reduction <maximumf>, %21, %cst_10 [1] : vector<1x8xf32> to vector<1xf32>
    %23 = vector.shape_cast %22 : vector<1xf32> to vector<1x1xf32>
    %24 = vector.broadcast %23 : vector<1x1xf32> to vector<1x8xf32>
    %25 = arith.subf %21, %24 : vector<1x8xf32>
    %26 = math.exp %25 : vector<1x8xf32>
    %cst_11 = arith.constant dense<0.000000e+00> : vector<1xf32>
    %27 = vector.multi_reduction <add>, %26, %cst_11 [1] : vector<1x8xf32> to vector<1xf32>
    %28 = vector.shape_cast %27 : vector<1xf32> to vector<1x1xf32>
    %29 = math.log %28 : vector<1x1xf32>
    %30 = vector.broadcast %29 : vector<1x1xf32> to vector<1x8xf32>
    %31 = arith.subf %25, %30 : vector<1x8xf32>
    %c0_12 = arith.constant 0 : index
    %c0_13 = arith.constant 0 : index
    %32 = vector.load %arg5[%c0_12, %c0_13] : memref<1x8xf32, #tpu.memory_space<vmem>>, vector<1x8xf32>
    tpu.vector_store %arg5[%c0_12, %c0_13], %31 {strides = array<i32>} : memref<1x8xf32, #tpu.memory_space<vmem>>, vector<1x8xf32>,
    return
  }
  func.func @transform_0(%arg0: i32) -> (i32, i32) {
    %c0_i32 = arith.constant 0 : i32
    %c0_i32_0 = arith.constant 0 : i32
    %c0_i32_1 = arith.constant 0 : i32
    return %c0_i32, %c0_i32_0 : i32, i32
  }
  func.func @transform_1(%arg0: i32) -> (i32, i32) {
    %c0_i32 = arith.constant 0 : i32
    %c0_i32_0 = arith.constant 0 : i32
    %c0_i32_1 = arith.constant 0 : i32
    return %c0_i32, %c0_i32_0 : i32, i32
  }
  func.func @transform_2(%arg0: i32) -> (i32, i32) {
    %c0_i32 = arith.constant 0 : i32
    %c0_i32_0 = arith.constant 0 : i32
    %c0_i32_1 = arith.constant 0 : i32
    return %c0_i32, %c0_i32_0 : i32, i32
  }
  func.func @transform_3(%arg0: i32) -> (i32, i32) {
    %c0_i32 = arith.constant 0 : i32
    %c0_i32_0 = arith.constant 0 : i32
    %c0_i32_1 = arith.constant 0 : i32
    return %c0_i32, %c0_i32_0 : i32, i32
  }
  func.func @transform_4(%arg0: i32) -> (i32, i32) {
    %c0_i32 = arith.constant 0 : i32
    %c0_i32_0 = arith.constant 0 : i32
    %c0_i32_1 = arith.constant 0 : i32
    return %c0_i32, %c0_i32_0 : i32, i32
  }
}

</mosaic_0001>

<bundles_post_ra>
// kernel: model1_forward.1
= control target key start
LH: loop header
LB: loop body
LE: loop exit
PB: predicated region body
PF: predicated region fallthrough
CT: control target
= control target key end

     0   :  { %s471_s0 = inlined_call_operand.<no memory space> [shape: s32[1,1], index: 0, kind: input, shape index: {}]   ;;  %s472_s1 = inlined_call_operand.vmem [shape: f32[1,8], index: 1, kind: input, shape index: {}]   ;;  %s473_s2 = inlined_call_operand.vmem [shape: f32[48,32], index: 2, kind: input, shape index: {}]   ;;  %s474_s3 = inlined_call_operand.vmem [shape: f32[40,8], index: 3, kind: input, shape index: {}]   ;;  %s475_s4 = inlined_call_operand.hbm [shape: f32[1,8], index: 4, kind: output, shape index: {}]  }
   0x1   :  { %v9_v0 = vstv %s471_s0 }
   0x2   :  { %10 = vst [vmem:[#allocation2] sm:$0x1] %v9_v0 }
   0x3   :  { %v20_v2 = vld [vmem:[%s473_s2] sm:$0xff]  ;;  %v21_v3 = vld [vmem:[%s473_s2 + $0x8] sm:$0xff]  ;;  %v385_v4 = vmov 0   ;;  %v386_v5 = vmov 0.0|0.0   ;;  %v22_v7 = vld [vmem:[%s473_s2 + $0x10] sm:$0xff] }
   0x4   :  { %356 = vset.pattern.permute.xlu0 %v385_v4  ;;  %339 = vmatprep.subr.bf16.mxu1 %v386_v5  ;;  %v340_v6 = vpack.c.bf16 %v21_v3, %v20_v2  ;;  %v23_v8 = vld [vmem:[%s473_s2 + $0x18] sm:$0xff] }
   0x9   :  { %v33_v1 = vld [vmem:[#allocation2] sm:$0x1] }
   0xa   :  { %11 = vsyncpa [#allocation4], 0  ;;  %35 = vperm.xlu0 %356, %v33_v1   ;;  %341 = vmatpush3.bf16.msra.mxu1 %v340_v6  ;;  %v387_v9 = vmov 0.0   ;;  %v343_v10 = vpack.c.bf16 %v23_v8, %v22_v7  ;;  %v24_v11 = vld [vmem:[%s473_s2 + $0x20] sm:$0xff]  ;;  %vm45_vm0 = vcmask 64512   ;;  %vm388_vm1 = vmmov 0  }
   0xb   :  { %312 = vmatprep.subr.mxu0 %v387_v9  ;;  %342 = vmatprep.subr.bf16.mxu1 %v386_v5  ;;  %v44_v12 = vld [vmem:[%s472_s1] sm:$0x1]  ;;  %v31_v13 = vlaneseq  ;;  %vm119_vm2 = vcmask 261120   ;;  %v27_v21 = vld [vmem:[%s474_s3 + $0x8] sm:$0xff]  ;;  %v28_v25 = vld [vmem:[%s474_s3 + $0x10] sm:$0xff]  ;;  %vm268_vm4 = vcmask 57344  }
   0xc   :  { %313 = vmatpush3.msra.mxu0 %v24_v11  ;;  %314 = vmatprep.mubr.msk.f32.mxu0 %vm388_vm1, %v387_v9  ;;  %v26_v20 = vld [vmem:[%s474_s3] sm:$0xff]  ;;  %v29_v26 = vld [vmem:[%s474_s3 + $0x18] sm:$0xff]  ;;  %v25_v28 = vld [vmem:[%s473_s2 + $0x28] sm:$0xff]  ;;  %s389_s2 = smov [#allocation3]  }
   0xd   :  { %325 = vmatprep.mubr.msk.f32.mxu1 %vm388_vm1, %v387_v9  ;;  %315 = vmatmul.mubr.msk.f32.vlgmr.msra.gmra.mrb[0].mxu0 %vm45_vm0, %v44_v12  ;;  %v38_v14 = vshrl.u32 %v31_v13, 7  ;;  %v32_v16 = vand.u32 127, %v31_v13  ;;  %v346_v22 = vpack.c.bf16 %v27_v21, %v26_v20  ;;  %v349_v27 = vpack.c.bf16 %v29_v26, %v28_v25  ;;  %v30_v34 = vld [vmem:[%s474_s3 + $0x20] sm:$0xff]  ;;  %s288_s3 = sshll.u32 %s389_s2, 4  ;;  %s289_s3 = int_to_ptr.vmem [resolvable:$true] %s288_s3 }
   0xe   :  { %345 = vmatprep.subr.bf16.mxu0 %v386_v5  ;;  %344 = vmatpush3.bf16.msra.mxu1 %v343_v10  ;;  %s361_s13 = scalar_lea.vmem %s289_s3, 16  ;;  %s365_s14 = scalar_lea.vmem %s289_s3, 32 }
   0xf   :  { %336 = vmatprep.mubr.msk.f32.mxu0 %vm388_vm1, %v387_v9  ;;  %v39_v15 = vsub.s32 0, %v38_v14  ;;  %347 = vmatpush3.bf16.msra.mxu0 %v346_v22  ;;  %p362_p0 = scmp.ne.s32.totalorder %s289_s3, %s361_s13  ;;  %p366_p1 = scmp.lt.s32.totalorder %s289_s3, %s289_s3 }
  0x10   :  { %348 = vmatprep.subr.bf16.mxu0 %v386_v5  ;;  %p367_p2 = scmp.lt.s32.totalorder %s365_s14, %s361_s13 }
  0x12   :  { %p368_p3 = por %p367_p2, %p366_p1 }
  0x13   :  { %350 = vmatpush3.bf16.msra.mxu0 %v349_v27 }
  0x14   :  { %p369_p4 = pnand %p368_p3, %p362_p0 }
  0x89   :  { %v36_v17 = vpop.permute.xlu0 %35 }
  0x8a   :  { %v40_v18 = vrot.slane %v36_v17, %v39_v15 }
  0x8c   :  { %vm41_vm3 = vcmp.eq.s32.totalorder %v32_v16, %v40_v18 }
  0x8d   :  { %v296_v19 = vsel %vm41_vm3, 1.0, %v387_v9 }
  0x8e   :  { %326 = vmatmul.mubr.msk.f32.vlgmr.msra.gmra.mrb[0].mxu1 %vm119_vm2, %v296_v19 }
  0xe0   :  { %v115_v23 = vpop.f32.mrb[0].mxu0 }
  0xe1   :  { %v316_v24 = vpop.f32.mrb[1].mxu0 }
 0x161   :  { %v189_v29 = vpop.f32.mrb[0].mxu1 }
 0x162   :  { %v190_v30 = vadd.f32 %v189_v29, %v115_v23  ;;  %v327_v31 = vpop.f32.mrb[1].mxu1 }
 0x164   :  { %v193_v32 = vadd.f32 %v190_v30, %v25_v28 }
 0x166   :  { %v194_v33 = vmax.f32 %v193_v32, 0.0 }
 0x168   :  { %337 = vmatmul.mubr.msk.f32.vlgmr.msra.gmra.mrb[2].mxu0 %vm119_vm2, %v194_v33 }
 0x23b   :  { %v264_v35 = vpop.f32.mrb[2].mxu0 }
 0x23c   :  { %v265_v36 = vadd.f32 %v264_v35, %v30_v34  ;;  %v338_v37 = vpop.f32.mrb[3].mxu0 }
 0x23e   :  { %v269_v38 = vsel %vm268_vm4, %v265_v36, -inf }
 0x23f   :  { %270 = vmax.xlane.f32.xlu0 %v269_v38 }
 0x2cc   :  { %v271_v39 = vpop.xlane.xlu0 %270 }
 0x2cd   :  { %v272_v40 = vsub.f32 %v265_v36, %v271_v39 }
 0x2cf   :  { %v273_v41 = vmul.f32 1.442695, %v272_v40 }
 0x2d1   :  { %357 = vpow2.f32 %v273_v41 }
 0x2db   :  { %v358_v42 = vpop.eup %357 }
 0x2dc   :  { %v275_v43 = vsel %vm268_vm4, %v358_v42, 0.0 }
 0x2dd   :  { %276 = vadd.xlane.f32.xlu1 %v275_v43 }
 0x36a   :  { %v277_v44 = vpop.xlane.xlu1 %276 }
 0x36b   :  { %359 = vlog2.f32 %v277_v44 }
 0x375   :  { %v360_v45 = vpop.eup %359 }
 0x376   :  { %v279_v46 = vmul.f32 0.6931472, %v360_v45 }
 0x378   :  { %v280_v47 = vsub.f32 %v272_v40, %v279_v46 }
 0x37a   :  { %281 = vst.msk [vmem:[#allocation3] sm:$0x1] %vm268_vm4, %v280_v47 }
 0x37b   :  { %372 = shalt.err (!%p369_p4)
}
 0x37c   :  { %s373_s17 = scalar_lea.hbm %s475_s4, 16 }
 0x37d   :  { %p374_p5 = scmp.ne.s32.totalorder %s475_s4, %s373_s17  ;;  %p377_p6 = scmp.lt.u32.totalorder %s373_s17, %s475_s4 }
 0x37f   :  { %p379_p7 = pnand %p377_p6, %p374_p5 }
 0x381   :  { %382 = shalt.err (!%p379_p7)
}
 0x382   :  { %291 = dma.vmem_to_hbm [thread:$0]  %s289_s3, 16, %s475_s4, [#allocation4]  }
 0x383   :  { %383 = dma.done.wait [#allocation4], 16  }
 0x384   :  { %384 = vsyncadd [#allocation4], 4294967280 }
 0x385   :  { %295 = vsyncpa [#allocation4], 1 }

</bundles_post_ra>
